<compile_context>
chip_gen: v7x
topology: tpu7x:2x2x1
jax: 0.10.0
libtpu: 0.0.40
codegen_flags: <defaults>
</compile_context>

<pallas_src>
import jax
import jax.numpy as jnp
from jax.experimental import pallas as pl
from jax.experimental.pallas import tpu as pltpu


def _nrr_fwd_kernel(x_ref, w1n_ref, b1_ref, w2_ref, elogr_ref, tilemat_ref,
                    lmc_ref, out_ref):
    # x_ref: (D, tT) -- one tile of xu^T; T is the lane axis everywhere below.
    x = x_ref[...]

    # --- MLP hot path (input normalization already folded into w1n / b1) ----
    h = jnp.dot(w1n_ref[...], x,
                preferred_element_type=jnp.float32) + b1_ref[...]     # (H, tT)
    h = jnp.maximum(h, 0.0)                                           # ReLU
    o = jnp.dot(w2_ref[...], h,
                preferred_element_type=jnp.float32)                   # (K, tT)

    # --- logsumexp over j of (logmat[k,j] + o[t,j]), separable max shift ----
    # lse[t,k] = mo[t] + ml[k] + log( sum_j exp(logmat[k,j]-ml[k]) exp(o[t,j]-mo[t]) )
    mo = jnp.max(o, axis=0, keepdims=True)                            # (1, tT)
    eo = jnp.exp(o - mo)                                              # (K, tT)
    # elogr row (k*K+j) == exp(logmat[k,:] - ml[k]) -> s[k*K+j, t] = inner sum for k
    s = jnp.dot(elogr_ref[...], eo,
                preferred_element_type=jnp.float32)                   # (K2, tT)
    s = jnp.maximum(s, 1e-38)     # underflow guard: keep log(s) finite

    # tiled_o[k*K+j, t] = o[j, t]  (expansion done on the MXU, lane-dense)
    tiled_o = jnp.dot(tilemat_ref[...], o,
                      preferred_element_type=jnp.float32)             # (K2, tT)

    # out[k*K+j, t] = (logmat[k,j] - ml[k]) + o[j,t] - mo[t] - log(s[k,t])
    out_ref[...] = lmc_ref[...] + tiled_o - mo - jnp.log(s)


def nrr_forward(xu, mean, std, w1, b1, w2, logmat, *, tile_t=1024):
    """Pallas wrapper. xu:(T,D), w1:(H,D), b1:(H,), w2:(K,H), logmat:(K,K)."""
    T, D = xu.shape
    H = w1.shape[0]
    K = w2.shape[0]
    K2 = K * K
    f32 = jnp.float32

    xu = xu.astype(f32)
    w1 = w1.astype(f32)
    b1 = b1.astype(f32)
    w2 = w2.astype(f32)
    mean = mean.astype(f32)
    std = std.astype(f32)
    logmat = logmat.astype(f32)

    # Fold (x - mean)/std into the first Linear (host side, once).
    #   (x - mean)/std @ W1^T + b1 == x @ (W1/std)^T + (b1 - W1 @ (mean/std))
    w1n = w1 / std[None, :]                          # (H, D)
    b1f = (b1 - w1 @ (mean / std)).reshape(H, 1)     # (H, 1)  lane-broadcast col

    # Tiny logmat-derived constants (K x K work, host side).
    ml = jnp.max(logmat, axis=-1, keepdims=True)                 # (K, 1)
    elogr = jnp.repeat(jnp.exp(logmat - ml), K, axis=0)          # (K2, K)
    lmc = (logmat - ml).reshape(K2, 1)                           # (K2, 1)
    tilemat = jnp.tile(jnp.eye(K, dtype=f32), (K, 1))            # (K2, K)
    # NOTE: bf16 MXU inputs (x/w1n/w2) would cut MXU passes ~3x but loosen the
    # 1e-5 tolerance; kept in f32 here.

    # T on the lane axis: feed xu transposed (pure layout plumbing).
    xu_t = xu.T                                                  # (D, T)

    # Lane-axis tile: large (amortize ~0.35us grid-step overhead), multiple of
    # 128, never exceeding the array extent.  Ragged last tile is masked by
    # Pallas; no host-side pad / slice needed.
    if T <= 128:
        tile = T                                   # full-dim block, 1 grid step
    else:
        tile = min(max(128, (int(tile_t) // 128) * 128), (T // 128) * 128)
    grid = (pl.cdiv(T, tile),)

    out_t = pl.pallas_call(
        _nrr_fwd_kernel,
        out_shape=jax.ShapeDtypeStruct((K2, T), f32),
        grid=grid,
        in_specs=[
            pl.BlockSpec((D, tile), lambda i: (0, i)),   # xu^T tile (pipelined)
            pl.BlockSpec((H, D), lambda i: (0, 0)),      # W1/std      (resident)
            pl.BlockSpec((H, 1), lambda i: (0, 0)),      # folded bias (resident)
            pl.BlockSpec((K, H), lambda i: (0, 0)),      # W2          (resident)
            pl.BlockSpec((K2, K), lambda i: (0, 0)),     # exp(logmat-ml), repeated
            pl.BlockSpec((K2, K), lambda i: (0, 0)),     # tile-expansion matrix
            pl.BlockSpec((K2, 1), lambda i: (0, 0)),     # logmat - ml, flat col
        ],
        out_specs=pl.BlockSpec((K2, tile), lambda i: (0, i)),
        compiler_params=pltpu.CompilerParams(
            # TODO(synk): on v7x, if "parallel" does not shard this T axis
            # across both TensorCores, switch it to pltpu.CORE_PARALLEL.
            dimension_semantics=("parallel",),
        ),
    )(xu_t, w1n, b1f, w2, elogr, tilemat, lmc)

    # (K2, T) -> (T, K, K): wrapper-side layout plumbing.
    return out_t.T.reshape(T, K, K)


def nrr_forward_ref(xu, mean, std, w1, b1, w2, logmat):
    """Pure-JAX reference mirroring the PyTorch forward."""
    xn = (xu - mean) / std
    h = jnp.maximum(xn @ w1.T + b1, 0.0)
    o = h @ w2.T
    lt = logmat[None, :, :] + o[:, None, :]
    return lt - jax.nn.logsumexp(lt, axis=-1, keepdims=True)


if __name__ == "__main__":
    # sizes = (D, H, K) -> Linear(D,H)+ReLU, Linear(H,K, bias=False); K states.
    # T = 300 exercises a multi-tile grid (tile=256 -> grid of 2) plus a ragged,
    # masked last tile, with no host-side padding or slicing.
    T, D, H, K = 300, 6, 32, 4

    key = jax.random.PRNGKey(0)
    k_xu, k_w1, k_b1, k_w2, k_mean, k_std = jax.random.split(key, 6)

    xu = jax.random.normal(k_xu, (T, D), dtype=jnp.float32)

    # Deterministic synthetic parameters (same shapes as the nn.Module).
    w1 = 0.1 * jax.random.normal(k_w1, (H, D), dtype=jnp.float32)
    b1 = 0.1 * jax.random.normal(k_b1, (H,), dtype=jnp.float32)
    w2 = 0.1 * jax.random.normal(k_w2, (K, H), dtype=jnp.float32)

    # norm dict: mean / std of the inputs.
    mean = 0.5 * jax.random.normal(k_mean, (D,), dtype=jnp.float32)
    std = 1.0 + 0.1 * jnp.abs(jax.random.normal(k_std, (D,), dtype=jnp.float32))

    # logmat initialized exactly like __init__: log of row-normalized ones.
    logmat = jnp.log(jnp.ones((K, K), dtype=jnp.float32) / K)

    out = nrr_forward(xu, mean, std, w1, b1, w2, logmat, tile_t=1024)
    out = jax.block_until_ready(out)

    ref = nrr_forward_ref(xu, mean, std, w1, b1, w2, logmat)
    assert out.shape == (T, K, K)
    assert jnp.allclose(out, ref, atol=1e-5, rtol=1e-5), "mismatch vs reference"
    # rows of exp(out) must sum to 1 (normalized log-transition matrices).
    assert jnp.allclose(jnp.sum(jnp.exp(out), axis=-1), 1.0, atol=1e-5)

    print("KERNEL_OK")
</pallas_src>

<mosaic_0001>
module attributes {stable_mosaic.version = 11 : i64} {
  func.func @_nrr_fwd_kernel(%arg0: i32, %arg1: memref<6x256xf32, #tpu.memory_space<vmem>>, %arg2: memref<32x6xf32, #tpu.memory_space<vmem>>, %arg3: memref<32x1xf32, #tpu.memory_space<vmem>>, %arg4: memref<4x32xf32, #tpu.memory_space<vmem>>, %arg5: memref<16x4xf32, #tpu.memory_space<vmem>>, %arg6: memref<16x4xf32, #tpu.memory_space<vmem>>, %arg7: memref<16x1xf32, #tpu.memory_space<vmem>>, %arg8: memref<16x256xf32, #tpu.memory_space<vmem>>) attributes {dimension_semantics = [#tpu.dimension_semantics<parallel>], iteration_bounds = array<i64: 2>, scalar_prefetch = 0 : i64, scratch_operands = 0 : i64, tpu.core_type = #tpu.core_type<tc>, window_params = [{transform_indices = @transform_0, window_bounds = array<i64: 6, 256>}, {pipeline_mode = #tpu.pipeline_mode<synchronous>, transform_indices = @transform_1, window_bounds = array<i64: 32, 6>}, {pipeline_mode = #tpu.pipeline_mode<synchronous>, transform_indices = @transform_2, window_bounds = array<i64: 32, 1>}, {pipeline_mode = #tpu.pipeline_mode<synchronous>, transform_indices = @transform_3, window_bounds = array<i64: 4, 32>}, {pipeline_mode = #tpu.pipeline_mode<synchronous>, transform_indices = @transform_4, window_bounds = array<i64: 16, 4>}, {pipeline_mode = #tpu.pipeline_mode<synchronous>, transform_indices = @transform_5, window_bounds = array<i64: 16, 4>}, {pipeline_mode = #tpu.pipeline_mode<synchronous>, transform_indices = @transform_6, window_bounds = array<i64: 16, 1>}, {transform_indices = @transform_7, window_bounds = array<i64: 16, 256>}]} {
    %c0 = arith.constant 0 : index
    %c0_0 = arith.constant 0 : index
    %0 = vector.load %arg1[%c0, %c0_0] : memref<6x256xf32, #tpu.memory_space<vmem>>, vector<6x256xf32>
    %c0_1 = arith.constant 0 : index
    %c0_2 = arith.constant 0 : index
    %1 = vector.load %arg2[%c0_1, %c0_2] : memref<32x6xf32, #tpu.memory_space<vmem>>, vector<32x6xf32>
    %cst = arith.constant dense<0.000000e+00> : vector<32x256xf32>
    %2 = tpu.matmul %1, %0, %cst {dimension_numbers = #tpu.dot_dimension_numbers<[1], [0], [0], [1], [0, 0, 1, 1], [], []>} : vector<32x6xf32>, vector<6x256xf32>, vector<32x256xf32> -> vector<32x256xf32>
    %c0_3 = arith.constant 0 : index
    %c0_4 = arith.constant 0 : index
    %3 = vector.load %arg3[%c0_3, %c0_4] : memref<32x1xf32, #tpu.memory_space<vmem>>, vector<32x1xf32>
    %4 = vector.broadcast %3 : vector<32x1xf32> to vector<32x256xf32>
    %5 = arith.addf %2, %4 : vector<32x256xf32>
    %cst_5 = arith.constant 0.000000e+00 : f32
    %6 = vector.broadcast %cst_5 : f32 to vector<32x256xf32>
    %7 = arith.maximumf %5, %6 : vector<32x256xf32>
    %c0_6 = arith.constant 0 : index
    %c0_7 = arith.constant 0 : index
    %8 = vector.load %arg4[%c0_6, %c0_7] : memref<4x32xf32, #tpu.memory_space<vmem>>, vector<4x32xf32>
    %cst_8 = arith.constant dense<0.000000e+00> : vector<4x256xf32>
    %9 = tpu.matmul %8, %7, %cst_8 {dimension_numbers = #tpu.dot_dimension_numbers<[1], [0], [0], [1], [0, 0, 1, 1], [], []>} : vector<4x32xf32>, vector<32x256xf32>, vector<4x256xf32> -> vector<4x256xf32>
    %cst_9 = arith.constant dense<0xFF800000> : vector<256xf32>
    %10 = vector.multi_reduction <maximumf>, %9, %cst_9 [0] : vector<4x256xf32> to vector<256xf32>
    %11 = vector.shape_cast %10 : vector<256xf32> to vector<1x256xf32>
    %12 = vector.broadcast %11 : vector<1x256xf32> to vector<4x256xf32>
    %13 = arith.subf %9, %12 : vector<4x256xf32>
    %14 = math.exp %13 : vector<4x256xf32>
    %c0_10 = arith.constant 0 : index
    %c0_11 = arith.constant 0 : index
    %15 = vector.load %arg5[%c0_10, %c0_11] : memref<16x4xf32, #tpu.memory_space<vmem>>, vector<16x4xf32>
    %cst_12 = arith.constant dense<0.000000e+00> : vector<16x256xf32>
    %16 = tpu.matmul %15, %14, %cst_12 {dimension_numbers = #tpu.dot_dimension_numbers<[1], [0], [0], [1], [0, 0, 1, 1], [], []>} : vector<16x4xf32>, vector<4x256xf32>, vector<16x256xf32> -> vector<16x256xf32>
    %cst_13 = arith.constant 9.99999935E-39 : f32
    %17 = vector.broadcast %cst_13 : f32 to vector<16x256xf32>
    %18 = arith.maximumf %16, %17 : vector<16x256xf32>
    %c0_14 = arith.constant 0 : index
    %c0_15 = arith.constant 0 : index
    %19 = vector.load %arg6[%c0_14, %c0_15] : memref<16x4xf32, #tpu.memory_space<vmem>>, vector<16x4xf32>
    %cst_16 = arith.constant dense<0.000000e+00> : vector<16x256xf32>
    %20 = tpu.matmul %19, %9, %cst_16 {dimension_numbers = #tpu.dot_dimension_numbers<[1], [0], [0], [1], [0, 0, 1, 1], [], []>} : vector<16x4xf32>, vector<4x256xf32>, vector<16x256xf32> -> vector<16x256xf32>
    %c0_17 = arith.constant 0 : index
    %c0_18 = arith.constant 0 : index
    %21 = vector.load %arg7[%c0_17, %c0_18] : memref<16x1xf32, #tpu.memory_space<vmem>>, vector<16x1xf32>
    %22 = vector.broadcast %21 : vector<16x1xf32> to vector<16x256xf32>
    %23 = arith.addf %22, %20 : vector<16x256xf32>
    %24 = vector.broadcast %11 : vector<1x256xf32> to vector<16x256xf32>
    %25 = arith.subf %23, %24 : vector<16x256xf32>
    %26 = math.log %18 : vector<16x256xf32>
    %27 = arith.subf %25, %26 : vector<16x256xf32>
    %c0_19 = arith.constant 0 : index
    %c0_20 = arith.constant 0 : index
    %28 = vector.load %arg8[%c0_19, %c0_20] : memref<16x256xf32, #tpu.memory_space<vmem>>, vector<16x256xf32>
    tpu.vector_store %arg8[%c0_19, %c0_20], %27 {strides = array<i32>} : memref<16x256xf32, #tpu.memory_space<vmem>>, vector<16x256xf32>,
    return
  }
  func.func @transform_0(%arg0: i32) -> (i32, i32) {
    %c0_i32 = arith.constant 0 : i32
    %c0_i32_0 = arith.constant 0 : i32
    return %c0_i32, %arg0 : i32, i32
  }
  func.func @transform_1(%arg0: i32) -> (i32, i32) {
    %c0_i32 = arith.constant 0 : i32
    %c0_i32_0 = arith.constant 0 : i32
    %c0_i32_1 = arith.constant 0 : i32
    return %c0_i32, %c0_i32_0 : i32, i32
  }
  func.func @transform_2(%arg0: i32) -> (i32, i32) {
    %c0_i32 = arith.constant 0 : i32
    %c0_i32_0 = arith.constant 0 : i32
    %c0_i32_1 = arith.constant 0 : i32
    return %c0_i32, %c0_i32_0 : i32, i32
  }
  func.func @transform_3(%arg0: i32) -> (i32, i32) {
    %c0_i32 = arith.constant 0 : i32
    %c0_i32_0 = arith.constant 0 : i32
    %c0_i32_1 = arith.constant 0 : i32
    return %c0_i32, %c0_i32_0 : i32, i32
  }
  func.func @transform_4(%arg0: i32) -> (i32, i32) {
    %c0_i32 = arith.constant 0 : i32
    %c0_i32_0 = arith.constant 0 : i32
    %c0_i32_1 = arith.constant 0 : i32
    return %c0_i32, %c0_i32_0 : i32, i32
  }
  func.func @transform_5(%arg0: i32) -> (i32, i32) {
    %c0_i32 = arith.constant 0 : i32
    %c0_i32_0 = arith.constant 0 : i32
    %c0_i32_1 = arith.constant 0 : i32
    return %c0_i32, %c0_i32_0 : i32, i32
  }
  func.func @transform_6(%arg0: i32) -> (i32, i32) {
    %c0_i32 = arith.constant 0 : i32
    %c0_i32_0 = arith.constant 0 : i32
    %c0_i32_1 = arith.constant 0 : i32
    return %c0_i32, %c0_i32_0 : i32, i32
  }
  func.func @transform_7(%arg0: i32) -> (i32, i32) {
    %c0_i32 = arith.constant 0 : i32
    %c0_i32_0 = arith.constant 0 : i32
    return %c0_i32, %arg0 : i32, i32
  }
}

</mosaic_0001>

<bundles_post_ra>
// kernel: tpu_custom_call.1
= control target key start
LH: loop header
LB: loop body
LE: loop exit
PB: predicated region body
PF: predicated region fallthrough
CT: control target
= control target key end

     0   :  { %12 = vsyncpa [#allocation3], 0  ;;  %s1271_s0 = inlined_call_operand.vmem [shape: f32[6,300], index: 0, kind: input, shape index: {}]   ;;  %s1272_s1 = inlined_call_operand.vmem [shape: f32[32,6], index: 1, kind: input, shape index: {}]   ;;  %s1273_s2 = inlined_call_operand.vmem [shape: f32[32,1], index: 2, kind: input, shape index: {}]   ;;  %s1274_s3 = inlined_call_operand.vmem [shape: f32[4,32], index: 3, kind: input, shape index: {}]   ;;  %s1275_s4 = inlined_call_operand.vmem [shape: f32[16,4], index: 4, kind: input, shape index: {}]   ;;  %s1276_s5 = inlined_call_operand.vmem [shape: f32[16,4], index: 5, kind: input, shape index: {}]   ;;  %s1277_s6 = inlined_call_operand.vmem [shape: f32[16,1], index: 6, kind: input, shape index: {}]   ;;  %s1278_s7 = inlined_call_operand.hbm [shape: f32[16,300], index: 7, kind: output, shape index: {}]  }
   0x1   :  { %14 = vsyncpa [#allocation3 + $0x1], 0  ;;  %s1064_s24 = smov 0   ;;  %s1066_s25 = smov 0  }
   0x2   :  { %s1068_s26 = smov 0   ;;  %s1070_s27 = smov 0  }
   0x3 LB: > { %s1085_s28 = sadd.s32 4294967295, %s1017_s27   ;;  %s854_s29 = sadd.s32 4294967294, %s1017_s27   ;;  %s1017_s27 = sphi %s1070_s27, %s1284_s27   ;;  %s1013_s26 = sphi %s1068_s26, %s1283_s26   ;;  %s1009_s25 = sphi %s1066_s25, %s1282_s25   ;;  %s1005_s24 = sphi %s1064_s24, %s1281_s24  }
   0x4   : > { %s1089_s30 = sadd.s32 1, %s1017_s27   ;;  %s179_s8 = sadd.s32 1, %s1013_s26 }
   0x5   : > { %s176_s9 = ssub.s32 %s1017_s27, %s1089_s30  ;;  %p189_p0 = scmp.ne.s32.totalorder %s1013_s26, %s1009_s25 }
   0x6   : > { %p177_p1 = scmp.eq.s32.totalorder %s176_s9, 0  ;;  %p190_p2 = scmp.eq.s32.totalorder %s1085_s28, 1 }
   0x7   : > { %p195_p3 = scmp.ne.s32.totalorder %s1009_s25, %s1005_s24  ;;  %p196_p4 = scmp.eq.s32.totalorder %s854_s29, 1 }
   0x8   : > { %s1100_s10 = scalar_select %p177_p1, %s1013_s26, %s179_s8  }
   0x9   : > { %p1102_p5 = por %p190_p2, %p189_p0  ;;  %p1106_p6 = por %p196_p4, %p195_p3 }
   0xa   : > { %p857_p7 = scmp.ge.s32.totalorder %s1017_s27, 1  ;;  %p249_p8 = scmp.lt.s32.totalorder %s1017_s27, 3 }
   0xc   : > { %p250_p9 = pnand %p857_p7, %p249_p8 }
   0xd   : > { %s1113_s13 = sshll.u32 (!%p250_p9), %s1085_s28, 1  ;;  %v1019_v0 = vmov (!%p250_p9), 0.0   ;;  %v310_v1 = vld [vmem:[%s1273_s2] sm:$0xff] (!%p250_p9)  ;;  %v1020_v2 = vmov (!%p250_p9), 0   ;;  %v312_v3 = vld [vmem:[%s1273_s2 + $0x10] sm:$0xff] (!%p250_p9)  ;;  %v311_v4 = vld [vmem:[%s1273_s2 + $0x8] sm:$0xff] (!%p250_p9) }
   0xe   : > { %253 = sbr.rel (%p250_p9) target bundleno = 770 (0x302), region = 48  ;;  %p290_p10 = scmp.lt.s32.totalorder (!%p250_p9), %s1113_s13, 2  ;;  %418 = vmatprep.mubr.f32.mxu0 (!%p250_p9), %v1019_v0  ;;  %520 = vmatprep.mubr.f32.mxu1 (!%p250_p9), %v1019_v0  ;;  %v313_v5 = vld [vmem:[%s1273_s2 + $0x18] sm:$0xff] (!%p250_p9)  ;;  %vm347_vm0 = vcmask (!%p250_p9), 1045504   ;;  %v306_v8 = vld [vmem:[%s1272_s1] sm:$0xff] (!%p250_p9)  ;;  %vm334_vm1 = vcmask (!%p250_p9), 48128  }
   0xf   : > { %941 = vset.pattern.permute.xlu0 (!%p250_p9), %v1020_v2  ;;  %942 = vset.pattern.permute.xlu1 (!%p250_p9), %v1020_v2  ;;  %v735_v9 = vld [vmem:[%s1277_s6] sm:$0xff] (!%p250_p9)  ;;  %v736_v10 = vld [vmem:[%s1277_s6 + $0x8] sm:$0xff] (!%p250_p9)  ;;  %v308_v12 = vld [vmem:[%s1272_s1 + $0x10] sm:$0xff] (!%p250_p9)  ;;  %vm452_vm2 = vcmask (!%p250_p9), 261120   ;;  %vm527_vm3 = vcmask (!%p250_p9), 1043456   ;;  %vm550_vm4 = vcmask (!%p250_p9), 31744  }
  0x10   : > { %316 = vperm.xlu0 (!%p250_p9), %941, %v310_v1   ;;  %326 = vperm.xlu1 (!%p250_p9), %942, %v312_v3   ;;  %v307_v11 = vld [vmem:[%s1272_s1 + $0x8] sm:$0xff] (!%p250_p9)  ;;  %v309_v13 = vld [vmem:[%s1272_s1 + $0x18] sm:$0xff] (!%p250_p9)  ;;  %v451_v46 = vld [vmem:[%s1274_s3] sm:$0xf] (!%p250_p9) }
  0x11   : > { %v644_v50 = vld [vmem:[%s1276_s5] sm:$0xff] (!%p250_p9) }
  0x14   : > { %321 = vperm.xlu0 (!%p250_p9), %941, %v311_v4   ;;  %331 = vperm.xlu1 (!%p250_p9), %942, %v313_v5  }
  0x15   : > { %s291_s18 = scalar_select %p290_p10, %s1113_s13, 2 }
  0x16   : > { %s780_s14 = ssub.s32 (%p1102_p5), 3, %s1113_s13 }
  0x17   : > { %s860_s23 = sshll.u32 %s291_s18, 3  ;;  %p781_p11 = scmp.lt.s32.totalorder (%p1102_p5), %s780_s14, 2 }
  0x18   : > { %s293_s9 = scalar_lea.vmem %s1271_s0, %s860_s23  ;;  %739 = vperm.xlu0 %941, %v735_v9   ;;  %744 = vperm.xlu1 %942, %v736_v10   ;;  %v645_v9 = vld [vmem:[%s1276_s5 + $0x8] sm:$0xff]  ;;  %s282_s23 = sand.u32 1, %s1009_s25  }
  0x19   : > { %v305_v6 = vld [vmem:[%s293_s9 + $0x8] sm:$0x3f]  ;;  %v304_v7 = vld [vmem:[%s293_s9] sm:$0x3f]  ;;  %s858_s29 = sshll.u32 %s282_s23, 5  ;;  %s1205_s9 = scalar_lea.sflag [#allocation3], %s282_s23 }
  0x1a   : > { %861 = vmatprep.subr.msk.mxu0 %vm347_vm0, %v305_v6  ;;  %v548_v6 = vld [vmem:[%s1275_s4] sm:$0xff]  ;;  %s284_s8 = scalar_lea.vmem [#allocation2], %s858_s29 }
  0x1b   : > { %862 = vmatpush1.msk.msra.mxu0 %vm347_vm0, %v304_v7 }
  0x1c   : > { %863 = vmatmul.mubr.msk.f32.vlgmr.msra.gmra.mrb[0].mxu0 %vm334_vm1, %v306_v8  ;;  %v549_v8 = vld [vmem:[%s1275_s4 + $0x8] sm:$0xff] }
  0x1d   : > { %424 = vmatprep.mubr.f32.mxu0 %v1019_v0 }
  0x20   : > { %864 = vmatmul.mubr.msk.f32.gmra.mrb[2].mxu0 %vm334_vm1, %v307_v11 }
  0x21   : > { %430 = vmatprep.mubr.f32.mxu0 %v1019_v0 }
  0x24   : > { %865 = vmatmul.mubr.msk.f32.gmra.mrb[4].mxu0 %vm334_vm1, %v308_v12 }
  0x25   : > { %436 = vmatprep.mubr.f32.mxu0 %v1019_v0 }
  0x28   : > { %866 = vmatmul.mubr.msk.f32.gmra.mrb[6].mxu0 %vm334_vm1, %v309_v13 }
  0x29   : > { %722 = vmatprep.mubr.f32.mxu0 %v1019_v0 }
  0x8f   : > { %v317_v14 = vpop.permute.xlu0 %316  ;;  %v327_v23 = vpop.permute.xlu1 %326 }
  0x93   : > { %v322_v18 = vpop.permute.xlu0 %321  ;;  %v332_v34 = vpop.permute.xlu1 %331 }
  0xef   : > { %v420_v15 = vpop.f32.mrb[0].mxu0 }
  0xf0   : > { %v422_v16 = vpop.f32.mrb[1].mxu0  ;;  %v421_v17 = vadd.f32 %v420_v15, %v317_v14 }
  0xf1   : > { %v423_v19 = vadd.f32 %v422_v16, %v317_v14 }
  0xf2   : > { %v443_v25 = vmax.f32 %v421_v17, 0.0 }
  0xf3   : > { %v426_v20 = vpop.f32.mrb[2].mxu0  ;;  %v444_v27 = vmax.f32 %v423_v19, 0.0 }
  0xf4   : > { %v427_v21 = vadd.f32 %v426_v20, %v322_v18  ;;  %v428_v22 = vpop.f32.mrb[3].mxu0  ;;  %v740_v20 = vpop.permute.xlu0 %739 }
  0xf5   : > { %v429_v24 = vadd.f32 %v428_v22, %v322_v18 }
  0xf6   : > { %v445_v26 = vmax.f32 %v427_v21, 0.0 }
  0xf7   : > { %v446_v28 = vmax.f32 %v429_v24, 0.0  ;;  %v432_v29 = vpop.f32.mrb[4].mxu0 }
  0xf8   : > { %v434_v30 = vpop.f32.mrb[5].mxu0  ;;  %v891_v31 = vpack.c.bf16 %v445_v26, %v443_v25  ;;  %v433_v33 = vadd.f32 %v432_v29, %v327_v23  ;;  %v745_v25 = vpop.permute.xlu1 %744 }
  0xf9   : > { %v889_v32 = vpack.c.bf16 %v446_v28, %v444_v27  ;;  %v435_v35 = vadd.f32 %v434_v30, %v327_v23 }
  0xfa   : > { %v447_v40 = vmax.f32 %v433_v33, 0.0 }
  0xfb   : > { %v438_v36 = vpop.f32.mrb[6].mxu0  ;;  %890 = vmatprep.subr.bf16.mxu1 %v889_v32  ;;  %v448_v42 = vmax.f32 %v435_v35, 0.0 }
  0xfc   : > { %v439_v37 = vadd.f32 %v438_v36, %v332_v34  ;;  %v440_v38 = vpop.f32.mrb[7].mxu0  ;;  %892 = vmatpush1.bf16.msra.mxu1 %v891_v31 }
  0xfd   : > { %v441_v39 = vadd.f32 %v440_v38, %v332_v34 }
  0xfe   : > { %v449_v41 = vmax.f32 %v439_v37, 0.0 }
  0xff   : > { %v450_v43 = vmax.f32 %v441_v39, 0.0 }
 0x100   : > { %v895_v44 = vpack.c.bf16 %v449_v41, %v447_v40 }
 0x101   : > { %v893_v45 = vpack.c.bf16 %v450_v43, %v448_v42 }
 0x103   : > { %894 = vmatprep.subr.bf16.mxu1 %v893_v45 }
 0x104   : > { %896 = vmatpush1.bf16.msra.mxu1 %v895_v44 }
 0x107   : > { %867 = vmatmul.mubr.msk.f32.vlgmr.msra.gmra.mrb[0].mxu1 %vm452_vm2, %v451_v46 }
 0x108   : > { %627 = vmatprep.mubr.f32.mxu1 %v1019_v0 }
 0x1da   : > { %v522_v47 = vpop.f32.mrb[0].mxu1 }
 0x1db   : > { %v528_v48 = vsel %vm527_vm3, %v522_v47, -inf  ;;  %v524_v49 = vpop.f32.mrb[1].mxu1 }
 0x1dc   : > { %v529_v51 = vrot.slane %v528_v48, 4  ;;  %v535_v52 = vsel %vm527_vm3, %v524_v49, -inf  ;;  %872 = vmatprep.subr.msk.mxu0 %vm527_vm3, %v524_v49 }
 0x1dd   : > { %v536_v53 = vrot.slane %v535_v52, 4  ;;  %873 = vmatpush1.msk.msra.mxu0 %vm527_vm3, %v522_v47 }
 0x1de   : > { %v530_v54 = vmax.f32 %v528_v48, %v529_v51  ;;  %874 = vmatmul.mubr.msk.f32.vlgmr.msra.gmra.mrb[8].mxu0 %vm550_vm4, %v644_v50 }
 0x1df   : > { %v537_v55 = vmax.f32 %v535_v52, %v536_v53 }
 0x1e0   : > { %v531_v56 = vrot.slane %v530_v54, 2 }
 0x1e1   : > { %v538_v57 = vrot.slane %v537_v55, 2 }
 0x1e2   : > { %v532_v58 = vmax.f32 %v530_v54, %v531_v56 }
 0x1e3   : > { %v539_v59 = vmax.f32 %v537_v55, %v538_v57 }
 0x1e4   : > { %v533_v60 = vrot.slane %v532_v58, 1 }
 0x1e5   : > { %v540_v61 = vrot.slane %v539_v59, 1 }
 0x1e6   : > { %v1172_v62 = vmax.f32 %v532_v58, %v533_v60 }
 0x1e7   : > { %v1174_v63 = vmax.f32 %v539_v59, %v540_v61 }
 0x1e8   : > { %v542_v1 = vsub.f32 %v522_v47, %v1172_v62 }
 0x1e9   : > { %v543_v2 = vsub.f32 %v524_v49, %v1174_v63 }
 0x1ea   : > { %v544_v3 = vmul.f32 1.442695, %v542_v1 }
 0x1eb   : > { %v546_v4 = vmul.f32 1.442695, %v543_v2 }
 0x1ed   : > { %943 = vpow2.f32 %v546_v4 }
 0x1ee   : > { %945 = vpow2.f32 %v544_v3 }
 0x1f7   : > { %v944_v5 = vpop.eup %943 }
 0x1f8   : > { %v946_v7 = vpop.eup %945  ;;  %868 = vmatprep.subr.msk.mxu1 %vm527_vm3, %v944_v5 }
 0x1f9   : > { %869 = vmatpush1.msk.msra.mxu1 %vm527_vm3, %v946_v7 }
 0x1fa   : > { %870 = vmatmul.mubr.msk.f32.vlgmr.msra.gmra.mrb[2].mxu1 %vm550_vm4, %v548_v6  ;;  %897 = vmatprep.subr.msk.mxu1 %vm527_vm3, %v524_v49 }
 0x1fb   : > { %898 = vmatpush1.msk.msra.mxu1 %vm527_vm3, %v522_v47  ;;  %633 = vmatprep.mubr.f32.mxu1 %v1019_v0 }
 0x1fe   : > { %871 = vmatmul.mubr.msk.f32.gmra.mrb[4].mxu1 %vm550_vm4, %v549_v8 }
 0x1ff   : > { %728 = vmatprep.mubr.f32.mxu1 %v1019_v0 }
 0x202   : > { %875 = vmatmul.mubr.msk.f32.vlgmr.msra.gmra.mrb[6].mxu1 %vm550_vm4, %v645_v9 }
 0x2b1   : > { %v724_v10 = vpop.f32.mrb[8].mxu0 }
 0x2b2   : > { %v726_v11 = vpop.f32.mrb[9].mxu0  ;;  %v747_v22 = vadd.f32 %v740_v20, %v724_v10 }
 0x2b3   : > { %v748_v23 = vadd.f32 %v740_v20, %v726_v11 }
 0x2b4   : > { %v751_v27 = vsub.f32 %v747_v22, %v1172_v62 }
 0x2b5   : > { %v752_v30 = vsub.f32 %v748_v23, %v1174_v63 }
 0x2cd   : > { %v629_v12 = vpop.f32.mrb[2].mxu1 }
 0x2ce   : > { %v640_v13 = vmax.f32 %v629_v12, 1e-38  ;;  %v631_v14 = vpop.f32.mrb[3].mxu1 }
 0x2cf   : > { %v641_v15 = vmax.f32 %v631_v14, 1e-38 }
 0x2d0   : > { %947 = vlog2.f32 %v640_v13 }
 0x2d1   : > { %949 = vlog2.f32 %v641_v15  ;;  %v635_v16 = vpop.f32.mrb[4].mxu1 }
 0x2d2   : > { %v642_v17 = vmax.f32 %v635_v16, 1e-38  ;;  %v637_v18 = vpop.f32.mrb[5].mxu1 }
 0x2d3   : > { %v643_v0 = vmax.f32 %v637_v18, 1e-38 }
 0x2d4   : > { %951 = vlog2.f32 %v642_v17 }
 0x2d5   : > { %953 = vlog2.f32 %v643_v0  ;;  %v730_v19 = vpop.f32.mrb[6].mxu1 }
 0x2d6   : > { %v732_v21 = vpop.f32.mrb[7].mxu1  ;;  %v749_v29 = vadd.f32 %v745_v25, %v730_v19 }
 0x2d7   : > { %v750_v32 = vadd.f32 %v745_v25, %v732_v21 }
 0x2d8   : > { %v753_v38 = vsub.f32 %v749_v29, %v1172_v62 }
 0x2d9   : > { %v754_v40 = vsub.f32 %v750_v32, %v1174_v63 }
 0x2da   : > { %v948_v24 = vpop.eup %947 }
 0x2db   : > { %v950_v26 = vpop.eup %949  ;;  %v756_v28 = vmul.f32 0.6931472, %v948_v24 }
 0x2dc   : > { %v758_v31 = vmul.f32 0.6931472, %v950_v26 }
 0x2dd   : > { %v763_v33 = vsub.f32 %v751_v27, %v756_v28 }
 0x2de   : > { %v952_v34 = vpop.eup %951  ;;  %v764_v35 = vsub.f32 %v752_v30, %v758_v31  ;;  %778 = sbr.rel (!%p1102_p5) target bundleno = 770 (0x302), region = 52 }
 0x2df   : > { %v954_v36 = vpop.eup %953  ;;  %767 = vst [vmem:[%s284_s8] sm:$0xff] %v763_v33  ;;  %v760_v37 = vmul.f32 0.6931472, %v952_v34 }
 0x2e0   : > { %768 = vst [vmem:[%s284_s8 + $0x8] sm:$0xff] %v764_v35  ;;  %v762_v39 = vmul.f32 0.6931472, %v954_v36 }
 0x2e1   : > { %v765_v41 = vsub.f32 %v753_v38, %v760_v37 }
 0x2e2   : > { %v766_v42 = vsub.f32 %v754_v40, %v762_v39 }
 0x2e3   : > { %769 = vst [vmem:[%s284_s8 + $0x10] sm:$0xff] %v765_v41 }
 0x2e4   : > { %770 = vst [vmem:[%s284_s8 + $0x18] sm:$0xff] %v766_v42 }
 0x2e5   : > { %s1286_s14 = smov (!%p781_p11, %s780_s14), 2 }
 0x2e6   : > { %s1213_s15 = sshll.u32 %s1286_s14, 8 }
 0x2e7   : > { %s785_s16 = ssub.s32 512, %s1213_s15 }
 0x2e8   : > { %786 = vsyncadd %s1205_s9, %s785_s16  ;;  %p879_p12 = scmp.ne.s32.totalorder %s1213_s15, 0  ;;  %s886_s11 = sshll.u32 %s1085_s28, 8 }
 0x2e9   : > { %s1222_s13 = scalar_lea.hbm %s1278_s7, %s886_s11  ;;  %s881_s19 = sshll.u32 %s1286_s14, 3 }
 0x2ea   : > { %s792_s20 = sshll.u32 %s284_s8, 4  ;;  %s1021_s22 = smov [#allocation2]   ;;  %s1225_s20 = int_to_ptr.vmem [resolvable:$true] %s792_s20 }
 0x2eb   : > { %s955_s21 = scalar_lea.vmem %s1225_s20, %s1213_s15  ;;  %s959_s23 = sshll.u32 %s1021_s22, 4  ;;  %s960_s23 = int_to_ptr.vmem [resolvable:$false] %s959_s23 }
 0x2ec   : > { %p956_p13 = scmp.ne.s32.totalorder %s1225_s20, %s955_s21  ;;  %s961_s28 = scalar_lea.vmem %s960_s23, 1024 }
 0x2ed   : > { %p962_p2 = scmp.lt.s32.totalorder %s1225_s20, %s960_s23  ;;  %p963_p3 = scmp.lt.s32.totalorder %s961_s28, %s955_s21 }
 0x2ee   : > { %p957_p0 = pnand %p956_p13, %p879_p12 }
 0x2ef   : > { %p964_p4 = por %p963_p3, %p962_p2 }
 0x2f0   : > { %p958_p1 = pneg %p957_p0 }
 0x2f2   : > { %p965_p5 = pnand %p964_p4, %p958_p1 }
 0x2f4   : > { %968 = shalt.err (!%p965_p5)
}
 0x2f5   : > { %s969_s29 = scalar_lea.hbm %s1222_s13, %s1213_s15  ;;  %s973_s11 = scalar_lea.hbm %s1278_s7, 768 }
 0x2f6   : > { %p970_p7 = scmp.ne.s32.totalorder %s1222_s13, %s969_s29  ;;  %p974_p10 = scmp.lt.u32.totalorder %s1222_s13, %s1278_s7 }
 0x2f7   : > { %p975_p11 = scmp.lt.u32.totalorder %s973_s11, %s969_s29  ;;  %p977_p0 = scmp.lt.u32.totalorder %s969_s29, %s1222_s13 }
 0x2f8   : > { %p971_p8 = pnand %p970_p7, %p879_p12 }
 0x2f9   : > { %p976_p13 = por %p975_p11, %p974_p10 }
 0x2fa   : > { %p972_p9 = pneg %p971_p8 }
 0x2fb   : > { %p978_p1 = por %p977_p0, %p976_p13 }
 0x2fd   : > { %p979_p2 = pnand %p978_p1, %p972_p9 }
 0x2ff   : > { %982 = shalt.err (!%p979_p2)
}
 0x300   : > { %s1022_s21 = smov 256   ;;  %s1023_s22 = smov 384  }
 0x301   : > { %798 = dma.vmem_to_hbm [thread:$0]  (%p879_p12), %s1225_s20, %s1213_s15, %s1222_s13, %s1205_s9, %s1022_s21, %s1023_s22, %s881_s19  }
 0x302 PF: > { %p904_p3 = scmp.ge.s32.totalorder %s1017_s27, 2  ;;  %s807_s23 = sand.u32 1, %s1005_s24  }
 0x303   : > { %s808_s28 = scalar_lea.sflag [#allocation3], %s807_s23 }
 0x304   : > { %p901_p4 = pnand %p904_p3, %p1106_p6 }
 0x306   : > { %1000 = dma.done.wait (!%p901_p4), %s808_s28, 512  }
 0x307   : > { %1002 = vsyncadd (!%p901_p4), %s808_s28, 4294966784  ;;  %p17_p5 = scmp.ge.s32.totalorder %s1089_s30, 4   ;;  %s1281_s24 = smov %s1009_s25 }
 0x308   : > { %s1282_s25 = smov %s1013_s26  ;;  %s1283_s26 = smov %s1100_s10 }
 0x309   : > { %s1284_s27 = smov %s1089_s30  ;;  %19 = sbr.rel (!%p17_p5) target bundleno = 3 (0x3), region = 83 }
 0x310   :  { %813 = vsyncpa [#allocation3], 1 }
 0x311   :  { %815 = vsyncpa [#allocation3 + $0x1], 1 }

</bundles_post_ra>
